<compile_context>
chip_gen: v7x
topology: tpu7x:2x2x1
jax: 0.10.0
libtpu: 0.0.40
codegen_flags: <defaults>
</compile_context>

<pallas_src>
import functools

import jax
import jax.numpy as jnp
from jax.experimental import pallas as pl
from jax.experimental.pallas import tpu as pltpu


# ---------------------------------------------------------------------------
# Generation-aware budgets.
# ---------------------------------------------------------------------------
@functools.lru_cache(maxsize=None)
def _budgets():
    """Returns (per-block byte budget, vmem_limit_bytes)."""
    vmem_phys = None
    try:
        info = pltpu.get_tpu_info()
        vmem_phys = int(getattr(info, "vmem_capacity_bytes", 0)) or None
    except Exception:
        vmem_phys = None
    if vmem_phys is None:
        # Unknown chip: stay inside the default 32 MiB scoped-VMEM limit
        # (in + out blocks, double buffered: 4 * 4 MiB = 16 MiB).
        return (4 << 20), (32 << 20)
    if vmem_phys <= (64 << 20):
        # v7x-class (64 MiB per TensorCore): 4 MiB blocks -> 16 MiB steady
        # footprint, leave pipelining headroom under a 24 MiB scoped limit.
        return (4 << 20), (24 << 20)
    # v5e / v6e (128 MiB physical VMEM): 8 MiB blocks -> 32 MiB steady
    # footprint; raise the scoped limit to 64 MiB.
    return (8 << 20), (64 << 20)


# ---------------------------------------------------------------------------
# Tile selection helpers (dtype aware).
# ---------------------------------------------------------------------------
def _sublane_granule(item):
    return max(8, 32 // item)            # f32: 8, bf16: 16, int8/fp8: 32


def _lane_candidates(item):
    lo = max(128, 512 // item)           # keep DMA rows >= 512 B
    return tuple(c for c in (4096, 2048, 1024, 512, 256, 128) if c >= lo)


def _sublane_candidates(item):
    g = _sublane_granule(item)
    return tuple(c for c in (1024, 512, 256, 128, 64, 32, 16, 8) if c % g == 0)


def _pick_tile(dim, candidates, max_elems):
    """Largest legal block extent for `dim` within an element budget:
      - the full dim if it fits (always a legal block extent),
      - else the largest candidate that divides it and fits,
      - else the largest candidate that fits (ragged edge is handled by a
        pl.cdiv grid + masked edge blocks),
      - else the smallest candidate (pathologically small budgets only)."""
    if dim <= max_elems:
        return dim
    for c in candidates:
        if c <= max_elems and dim % c == 0:
            return c
    for c in candidates:
        if c <= max_elems:
            return c
    return candidates[-1]


def _cost(x):
    return pl.CostEstimate(flops=0, transcendentals=0,
                           bytes_accessed=int(2 * x.size * x.dtype.itemsize))


def _compiler_params(grid_rank, vmem_limit):
    return pltpu.CompilerParams(
        dimension_semantics=("parallel",) * grid_rank,
        vmem_limit_bytes=int(vmem_limit))


# ---------------------------------------------------------------------------
# Kernel bodies.
# ---------------------------------------------------------------------------
def _copy_kernel(x_ref, o_ref):
    o_ref[...] = x_ref[...]


def _swap01_kernel(x_ref, o_ref):
    # (bt, ct, t) -> (ct, bt, t): sublane-level relayout, lanes untouched.
    o_ref[...] = jnp.swapaxes(x_ref[...], 0, 1)


def _xpose_kernel(x_ref, o_ref):
    # (rt, ct) -> (ct, rt): minor-dims transpose (XLU).
    o_ref[...] = x_ref[...].T


# ---------------------------------------------------------------------------
# Path A1: both swapped dims are batch dims (pure index-map relayout).
# ---------------------------------------------------------------------------
def _batch_swap(x, d1, d2, out_sds):
    nd, item = x.ndim, x.dtype.itemsize
    sub, last = nd - 2, nd - 1
    budget, vmem_limit = _budgets()
    be = max(1024, budget // item)

    t = _pick_tile(x.shape[last], _lane_candidates(item), be)
    s = _pick_tile(x.shape[sub], _sublane_candidates(item), max(1, be // t))

    # Fold dims strictly between d2 and the sublane dim (untouched by the
    # swap), then a chunk of d2 itself, into the block (budget permitting).
    rem = max(1, be // (t * s))
    chunk = {}
    for dim in range(sub - 1, d2, -1):        # innermost first
        c = min(x.shape[dim], rem)
        chunk[dim] = c
        rem = max(1, rem // c)
    b2 = min(x.shape[d2], rem)

    in_block, out_block, grid = [], [], []
    for i in range(nd):
        if i == last:
            in_block.append(t); out_block.append(t)
            grid.append(pl.cdiv(x.shape[i], t))
        elif i == sub:
            in_block.append(s); out_block.append(s)
            grid.append(pl.cdiv(x.shape[i], s))
        elif i in chunk:
            c = chunk[i]
            in_block.append(c); out_block.append(c)
            grid.append(pl.cdiv(x.shape[i], c))
        elif i == d2:
            in_block.append(b2); out_block.append(None)
            grid.append(pl.cdiv(x.shape[i], b2))
        elif i == d1:
            in_block.append(None); out_block.append(b2)
            grid.append(x.shape[i])
        else:
            in_block.append(None); out_block.append(None)
            grid.append(x.shape[i])

    def in_map(*g):
        return tuple(g)

    def out_map(*g):
        g = list(g)
        g[d1], g[d2] = g[d2], g[d1]
        return tuple(g)

    return pl.pallas_call(
        _copy_kernel, out_shape=out_sds, grid=tuple(grid),
        in_specs=[pl.BlockSpec(tuple(in_block), in_map)],
        out_specs=pl.BlockSpec(tuple(out_block), out_map),
        compiler_params=_compiler_params(nd, vmem_limit),
        cost_estimate=_cost(x))(x)


# ---------------------------------------------------------------------------
# Path A2: swap of a batch dim with the second-to-last (sublane) dim.
# ---------------------------------------------------------------------------
def _sublane_swap(x, d1, out_sds):
    nd, item = x.ndim, x.dtype.itemsize
    sub, last = nd - 2, nd - 1
    budget, vmem_limit = _budgets()
    be = max(1024, budget // item)
    sub_c = _sublane_candidates(item)
    g8 = _sublane_granule(item)
    bt_res = min(g8, x.shape[d1])
    ct_res = min(g8, x.shape[sub])

    # Budget is enforced exactly: t is capped so there is room for at least a
    # granule-sized chunk on both swapped dims, ct is picked after reserving
    # bt_res, and bt gets whatever is left -> bt * ct * t * item <= budget.
    t = _pick_tile(x.shape[last], _lane_candidates(item),
                   max(128, be // max(1, bt_res * ct_res)))
    ct = _pick_tile(x.shape[sub], sub_c, max(ct_res, be // (t * bt_res)))
    bt = _pick_tile(x.shape[d1], sub_c, max(bt_res, be // (t * ct)))

    in_block, out_block, grid = [], [], []
    for i in range(nd):
        if i == last:
            in_block.append(t); out_block.append(t)
            grid.append(pl.cdiv(x.shape[i], t))
        elif i == sub:
            in_block.append(ct); out_block.append(bt)
            grid.append(pl.cdiv(x.shape[i], ct))
        elif i == d1:
            in_block.append(bt); out_block.append(ct)
            grid.append(pl.cdiv(x.shape[i], bt))
        else:
            in_block.append(None); out_block.append(None)
            grid.append(x.shape[i])

    def in_map(*g):
        return tuple(g)

    def out_map(*g):
        g = list(g)
        g[d1], g[sub] = g[sub], g[d1]
        return tuple(g)

    return pl.pallas_call(
        _swap01_kernel, out_shape=out_sds, grid=tuple(grid),
        in_specs=[pl.BlockSpec(tuple(in_block), in_map)],
        out_specs=pl.BlockSpec(tuple(out_block), out_map),
        compiler_params=_compiler_params(nd, vmem_limit),
        cost_estimate=_cost(x))(x)


# ---------------------------------------------------------------------------
# Path B: swap of the last two dims (minor transpose).
# ---------------------------------------------------------------------------
def _minor_transpose(x, out_sds):
    nd, item = x.ndim, x.dtype.itemsize
    sub, last = nd - 2, nd - 1
    budget, vmem_limit = _budgets()
    be = max(1024, budget // item)
    cands = _lane_candidates(item)     # multiples of 128: legal on both sides

    # Larger extent on rt (the OUTPUT lane dim) so output stores stay dense.
    rt = _pick_tile(x.shape[sub], cands, max(128, be // 128))
    ct = _pick_tile(x.shape[last], cands, max(128, be // rt))

    in_block, out_block, grid = [], [], []
    for i in range(nd):
        if i == last:
            in_block.append(ct); out_block.append(rt)
            grid.append(pl.cdiv(x.shape[i], ct))
        elif i == sub:
            in_block.append(rt); out_block.append(ct)
            grid.append(pl.cdiv(x.shape[i], rt))
        else:
            in_block.append(None); out_block.append(None)
            grid.append(x.shape[i])

    def in_map(*g):
        return tuple(g)

    def out_map(*g):
        return tuple(g[:sub]) + (g[last], g[sub])

    return pl.pallas_call(
        _xpose_kernel, out_shape=out_sds, grid=tuple(grid),
        in_specs=[pl.BlockSpec(tuple(in_block), in_map)],
        out_specs=pl.BlockSpec(tuple(out_block), out_map),
        compiler_params=_compiler_params(nd, vmem_limit),
        cost_estimate=_cost(x))(x)


# ---------------------------------------------------------------------------
# Public wrapper (torch.transpose semantics).
# ---------------------------------------------------------------------------
def transpose_pallas(x, dim1=0, dim2=1):
    """Pallas-TPU equivalent of torch.transpose(x, dim1, dim2)."""
    nd = x.ndim
    if nd == 0:
        return x
    d1, d2 = sorted((dim1 % nd, dim2 % nd))
    if d1 == d2:
        return x                      # identical dims: no-op
    out_shape = list(x.shape)
    out_shape[d1], out_shape[d2] = out_shape[d2], out_shape[d1]
    out_sds = jax.ShapeDtypeStruct(tuple(out_shape), x.dtype)
    sub, last = nd - 2, nd - 1

    if d1 == sub and d2 == last:
        return _minor_transpose(x, out_sds)
    if d2 == last:
        # TODO(synk): batch<->lane swap across an intervening sublane dim is
        # left to XLA (needs a major<->minor in-VMEM 3-D transpose).
        return jnp.swapaxes(x, d1, d2)
    if d2 == sub:
        return _sublane_swap(x, d1, out_sds)
    return _batch_swap(x, d1, d2, out_sds)


class TransposeLayer:
    """Drop-in analogue of the PyTorch module."""

    def __init__(self, dim1=0, dim2=1):
        self.dim1, self.dim2 = dim1, dim2

    def __call__(self, x):
        return transpose_pallas(x, self.dim1, self.dim2)


if __name__ == "__main__":
    key = jax.random.PRNGKey(0)
    k = jax.random.split(key, 6)

    # Case 1: default TransposeLayer() (dims 0,1) on [B, C, N]  -> sublane swap.
    x1 = jax.random.normal(k[0], (2, 4, 256), dtype=jnp.float32)
    y1 = jax.block_until_ready(TransposeLayer()(x1))
    assert y1.shape == (4, 2, 256)
    assert jnp.array_equal(y1, jnp.swapaxes(x1, 0, 1))

    # Case 2: TransposeLayer(1, 2) on [B, C, N]  -> minor (lane) transpose.
    x2 = jax.random.normal(k[1], (2, 16, 128), dtype=jnp.float32)
    y2 = jax.block_until_ready(TransposeLayer(1, 2)(x2))
    assert jnp.array_equal(y2, jnp.swapaxes(x2, 1, 2))

    # Case 3: TransposeLayer() on a 2-D [features, channels] matrix.
    x3 = jax.random.normal(k[2], (128, 384), dtype=jnp.float32)
    y3 = jax.block_until_ready(TransposeLayer()(x3))
    assert jnp.array_equal(y3, x3.T)

    # Case 4: TransposeLayer() on a 4-D tensor -> pure index-map batch swap
    #         (blocks carry the d2 chunk + trailing plane, not 1-planes).
    x4 = jax.random.normal(k[3], (2, 3, 8, 128), dtype=jnp.float32)
    y4 = jax.block_until_ready(TransposeLayer()(x4))
    assert jnp.array_equal(y4, jnp.swapaxes(x4, 0, 1))

    # Case 5: bf16 batch<->sublane swap (dtype-aware sublane granule = 16).
    x5 = jax.random.normal(k[4], (16, 2, 32, 256), dtype=jnp.bfloat16)
    y5 = jax.block_until_ready(TransposeLayer(0, 2)(x5))
    assert jnp.array_equal(y5, jnp.swapaxes(x5, 0, 2))

    # Case 6: batch<->lane swap: documented XLA fallback path.
    x6 = jax.random.normal(k[5], (2, 8, 128), dtype=jnp.float32)
    y6 = jax.block_until_ready(transpose_pallas(x6, 0, -1))
    assert jnp.array_equal(y6, jnp.swapaxes(x6, 0, 2))

    print("KERNEL_OK")
</pallas_src>

<mosaic_0001>
module attributes {stable_mosaic.version = 11 : i64} {
  func.func @_swap01_kernel(%arg0: i32, %arg1: i32, %arg2: i32, %arg3: memref<2x4x256xf32, #tpu.memory_space<vmem>>, %arg4: memref<4x2x256xf32, #tpu.memory_space<vmem>>) attributes {dimension_semantics = [#tpu.dimension_semantics<parallel>, #tpu.dimension_semantics<parallel>, #tpu.dimension_semantics<parallel>], iteration_bounds = array<i64: 1, 1, 1>, scalar_prefetch = 0 : i64, scratch_operands = 0 : i64, tpu.core_type = #tpu.core_type<tc>, window_params = [{transform_indices = @transform_0, window_bounds = array<i64: 2, 4, 256>}, {transform_indices = @transform_1, window_bounds = array<i64: 4, 2, 256>}]} {
    %c0 = arith.constant 0 : index
    %c0_0 = arith.constant 0 : index
    %c0_1 = arith.constant 0 : index
    %0 = vector.load %arg3[%c0, %c0_0, %c0_1] : memref<2x4x256xf32, #tpu.memory_space<vmem>>, vector<2x4x256xf32>
    %1 = tpu.transpose %0, [1, 0, 2] : vector<2x4x256xf32> -> vector<4x2x256xf32>
    %c0_2 = arith.constant 0 : index
    %c0_3 = arith.constant 0 : index
    %c0_4 = arith.constant 0 : index
    %2 = vector.load %arg4[%c0_2, %c0_3, %c0_4] : memref<4x2x256xf32, #tpu.memory_space<vmem>>, vector<4x2x256xf32>
    tpu.vector_store %arg4[%c0_2, %c0_3, %c0_4], %1 {strides = array<i32>} : memref<4x2x256xf32, #tpu.memory_space<vmem>>, vector<4x2x256xf32>,
    return
  }
  func.func @transform_0(%arg0: i32, %arg1: i32, %arg2: i32) -> (i32, i32, i32) {
    %c0_i32 = arith.constant 0 : i32
    return %arg0, %arg1, %arg2 : i32, i32, i32
  }
  func.func @transform_1(%arg0: i32, %arg1: i32, %arg2: i32) -> (i32, i32, i32) {
    %c0_i32 = arith.constant 0 : i32
    return %arg1, %arg0, %arg2 : i32, i32, i32
  }
}

</mosaic_0001>

<bundles_post_ra>
// kernel: tpu_custom_call.1
= control target key start
LH: loop header
LB: loop body
LE: loop exit
PB: predicated region body
PF: predicated region fallthrough
CT: control target
= control target key end

     0   :  { %6 = vsyncpa [#allocation3], 0  ;;  %s252_s0 = inlined_call_operand.hbm [shape: f32[2,4,256], index: 0, kind: input, shape index: {}]   ;;  %s253_s1 = inlined_call_operand.hbm [shape: f32[4,2,256], index: 1, kind: output, shape index: {}]  }
   0x1   :  { %7 = vsyncpa [#allocation4], 0  ;;  %s209_s6 = smov [#allocation2]   ;;  %s161_s10 = scalar_lea.hbm %s252_s0, 256 }
   0x2   :  { %s13_s7 = sshll.u32 %s209_s6, 4  ;;  %p162_p0 = scmp.ne.s32.totalorder %s252_s0, %s161_s10  ;;  %s14_s7 = int_to_ptr.vmem [resolvable:$true] %s13_s7 }
   0x3   :  { %p165_p1 = scmp.lt.u32.totalorder %s161_s10, %s252_s0 }
   0x5   :  { %p167_p2 = pnand %p165_p1, %p162_p0 }
   0x7   :  { %170 = shalt.err (!%p167_p2)
}
   0x8   :  { %s171_s15 = scalar_lea.vmem %s14_s7, 256  ;;  %p176_p4 = scmp.lt.s32.totalorder %s14_s7, %s14_s7 }
   0x9   :  { %p172_p3 = scmp.ne.s32.totalorder %s14_s7, %s171_s15  ;;  %p177_p5 = scmp.lt.s32.totalorder %s171_s15, %s171_s15 }
   0xb   :  { %p178_p6 = por %p177_p5, %p176_p4 }
   0xd   :  { %p179_p7 = pnand %p178_p6, %p172_p3 }
   0xf   :  { %182 = shalt.err (!%p179_p7)
}
  0x10   :  { %s210_s16 = smov 128   ;;  %s211_s17 = smov 8  }
  0x11   :  { %19 = dma.hbm_to_vmem [thread:$0]  %s252_s0, 256, %s14_s7, [#allocation3], %s210_s16, %s210_s16, %s211_s17  }
  0x12   :  { %205 = dma.done.wait [#allocation3], 256  }
  0x13   :  { %206 = vsyncadd [#allocation3], 4294967040  ;;  %v29_v0 = vlaneseq  ;;  %v212_v1 = vmov 1983009808   ;;  %v213_v4 = vmov 1934713408  }
  0x14   :  { %v27_v2 = vunpack.c.l.s4 %v212_v1  ;;  %v58_v5 = vunpack.c.l.s4 %v213_v4  ;;  %v23_v9 = vld [vmem:[#allocation2] sm:$0xff]  ;;  %v24_v10 = vld [vmem:[#allocation2 + $0x8] sm:$0xff]  ;;  %v214_v12 = vmov 0.0   ;;  %s215_s0 = smov [#allocation5]  }
  0x15   :  { %v30_v3 = vshrl.u32 %v29_v0, 7  ;;  %v25_v13 = vcombine.high %v23_v9, %v214_v12  ;;  %v40_v15 = vcombine.high %v24_v10, %v214_v12  ;;  %s136_s20 = sshll.u32 %s215_s0, 4  ;;  %s137_s20 = int_to_ptr.vmem [resolvable:$true] %s136_s20 }
  0x16   :  { %v28_v6 = vunpack.c.0.s8 %v27_v2  ;;  %v59_v7 = vunpack.c.0.s8 %v58_v5  ;;  %s183_s21 = scalar_lea.vmem %s137_s20, 256  ;;  %p188_p9 = scmp.lt.s32.totalorder %s137_s20, %s137_s20 }
  0x17   :  { %p184_p8 = scmp.ne.s32.totalorder %s137_s20, %s183_s21  ;;  %p189_p10 = scmp.lt.s32.totalorder %s183_s21, %s183_s21 }
  0x18   :  { %v31_v8 = vsub.s32 %v28_v6, %v30_v3  ;;  %v62_v11 = vsub.s32 %v59_v7, %v30_v3 }
  0x19   :  { %p190_p11 = por %p189_p10, %p188_p9 }
  0x1a   :  { %v32_v14 = vrot.slane %v23_v9, %v31_v8  ;;  %v47_v16 = vrot.slane %v24_v10, %v31_v8  ;;  %v39_v17 = vrot.slane %v25_v13, %v31_v8  ;;  %v54_v18 = vrot.slane %v40_v15, %v31_v8 }
  0x1b   :  { %p191_p12 = pnand %p190_p11, %p184_p8 }
  0x1c   :  { %v55_v19 = vcombine.low %v32_v14, %v47_v16  ;;  %v56_v20 = vcombine.high %v32_v14, %v47_v16  ;;  %v71_v22 = vcombine.low %v39_v17, %v54_v18  ;;  %v72_v24 = vcombine.high %v39_v17, %v54_v18 }
  0x1e   :  { %v63_v21 = vrot.slane %v55_v19, %v62_v11  ;;  %v70_v23 = vrot.slane %v56_v20, %v62_v11  ;;  %v79_v25 = vrot.slane %v71_v22, %v62_v11  ;;  %v86_v26 = vrot.slane %v72_v24, %v62_v11 }
  0x20   :  { %v87_v27 = vcombine.low %v63_v21, %v79_v25  ;;  %v88_v28 = vcombine.high %v63_v21, %v79_v25  ;;  %v89_v29 = vcombine.low %v70_v23, %v86_v26  ;;  %v90_v30 = vcombine.high %v70_v23, %v86_v26 }
  0x22   :  { %148 = vst.sshfl [vmem:[#allocation5] sm:$0x33 pattern:$0x76325410] %v87_v27 }
  0x23   :  { %149 = vst.sshfl [vmem:[#allocation5 + $0x4] sm:$0x33 pattern:$0x76325410] %v88_v28 }
  0x24   :  { %150 = vst.sshfl [vmem:[#allocation5 + $0x8] sm:$0x33 pattern:$0x76325410] %v89_v29 }
  0x25   :  { %151 = vst.sshfl [vmem:[#allocation5 + $0xc] sm:$0x33 pattern:$0x76325410] %v90_v30 }
  0x26   :  { %194 = shalt.err (!%p191_p12)
}
  0x27   :  { %s195_s24 = scalar_lea.hbm %s253_s1, 256 }
  0x28   :  { %p196_p13 = scmp.ne.s32.totalorder %s253_s1, %s195_s24  ;;  %p199_p0 = scmp.lt.u32.totalorder %s195_s24, %s253_s1 }
  0x2a   :  { %p201_p1 = pnand %p199_p0, %p196_p13 }
  0x2c   :  { %204 = shalt.err (!%p201_p1)
}
  0x2d   :  { %s216_s29 = smov 64   ;;  %s217_s30 = smov 4  }
  0x2e   :  { %142 = dma.vmem_to_hbm [thread:$0]  %s137_s20, 256, %s253_s1, [#allocation4], %s216_s29, %s216_s29, %s217_s30  }
  0x2f   :  { %207 = dma.done.wait [#allocation4], 256  }
  0x30   :  { %208 = vsyncadd [#allocation4], 4294967040 }
  0x31   :  { %146 = vsyncpa [#allocation3], 1 }
  0x32   :  { %147 = vsyncpa [#allocation4], 1 }

</bundles_post_ra>
